<compile_context>
chip_gen: v5e
topology: v5e:2x2
jax: 0.10.0
libtpu: 0.0.40
codegen_flags: <defaults>
</compile_context>

<pallas_src>
import functools
import math

import jax
import jax.numpy as jnp
from jax.experimental import pallas as pl
from jax.experimental.pallas import tpu as pltpu

INF = 100000000

# ------------------------- synthetic config (deterministic) -------------------------
PRE_NMS_THRESH = 0.05
PRE_NMS_TOP_N = 16          # fixed, static top-K (stands in for dynamic pre_nms_top_n)
NMS_THRESH = 0.6
FPN_POST_NMS_TOP_N = 16
MIN_SIZE = 0
NUM_CLASSES = 5             # includes background -> C = 4 class channels
MASK_SCALE_FACTOR = 2
FPN_STRIDES = [8, 16, 32, 64, 128]
MASK_TH = math.log(0.5)
PRIOR_MARGIN = 2.0
INIT_MARGIN = -math.log(0.5) / PRIOR_MARGIN ** 2
FIX_MARGIN = False
POST_PROCESS_MASKS = False


def _pick_lane_tile(total, max_tile=4096):
    """Largest lane tile (multiple of 128 dividing `total`, or the full extent)."""
    if total <= max_tile:
        return total
    t = (max_tile // 128) * 128
    while t >= 128:
        if total % t == 0:
            return t
        t -= 128
    return total


# ------------------------------ Pallas kernel 1: scoring -----------------------------
def _score_kernel(cls_ref, ctr_ref, scores_ref):
    # layout: cls_ref (1, C, T); ctr_ref (1, 1, T); scores_ref (1, C, T)
    cls = jax.nn.sigmoid(cls_ref[0])                     # (C, T)
    ctr = jax.nn.sigmoid(ctr_ref[0])                     # (1, T)
    # Candidate threshold folded into the score: non-candidates get -1 so they always
    # lose the top_k in glue.  Candidate scores are strictly > 0 (sigmoid products).
    scores_ref[0] = jnp.where(cls > PRE_NMS_THRESH, cls * ctr, -1.0)


def score_kernel_call(box_cls, centerness):
    N, C, HW = box_cls.shape
    T = _pick_lane_tile(HW)
    grid = (N, HW // T)
    return pl.pallas_call(
        _score_kernel,
        out_shape=jax.ShapeDtypeStruct((N, C, HW), jnp.float32),
        grid_spec=pltpu.PrefetchScalarGridSpec(
            num_scalar_prefetch=0,
            grid=grid,
            in_specs=[
                pl.BlockSpec((1, C, T), lambda n, t: (n, 0, t)),
                pl.BlockSpec((1, 1, T), lambda n, t: (n, 0, t)),
            ],
            out_specs=pl.BlockSpec((1, C, T), lambda n, t: (n, 0, t)),
        ),
        compiler_params=pltpu.CompilerParams(
            dimension_semantics=("parallel", "parallel")),
    )(box_cls, centerness)


# ---------------------- Pallas kernel 2: mask probability (mask_prob_cuda) -----------
def _mask_prob_kernel(pix_ref, eaug_ref, mar_ref, box_ref, prob_ref, *, o_w, tile):
    # layout: pix_ref (1, D, T) bf16 pixel embedding lane-tile
    #         eaug_ref (1, K, D+2) f32 = [-2E | e2 | 1]
    #         mar_ref (1, K, 1), box_ref (1, K, 4) int32 = [x1,y1,x2,y2]
    P = pix_ref[0].astype(jnp.float32)                       # (D, T)
    p2 = jnp.sum(P * P, axis=0, keepdims=True)               # (1, T)
    ones = jnp.ones_like(p2)                                 # (1, T)
    P_aug = jnp.concatenate([P, ones, p2], axis=0)           # (D+2, T)
    E_aug = eaug_ref[0]                                      # (K, D+2)
    # d2 = -2*E@P + e2 + p2 in a single MXU pass.
    d2 = jnp.dot(E_aug, P_aug, preferred_element_type=jnp.float32)   # (K, T)
    d2 = jnp.maximum(d2, 0.0)                                # clamp cancellation error
    prob = jnp.exp(-d2 * mar_ref[0])                         # (K, T)

    # In-kernel pixel coordinates for this lane tile (no xx/yy HBM inputs).
    start = pl.program_id(1) * tile
    lane = jax.lax.broadcasted_iota(jnp.int32, (1, tile), 1) + start  # (1, T)
    xx = lane % o_w
    yy = lane // o_w
    box = box_ref[0]                                         # (K, 4) int32
    x1 = box[:, 0:1]
    y1 = box[:, 1:2]
    x2 = box[:, 2:3]
    y2 = box[:, 3:4]
    inside = (xx >= x1) & (xx < x2) & (yy >= y1) & (yy < y2)
    prob_ref[0] = jnp.where(inside, prob, 0.0)


def mask_prob_call(pixel_embed_flat, e_aug, prop_margin, mask_boxes, o_w):
    N, D, HWm = pixel_embed_flat.shape
    K = e_aug.shape[1]
    DA = e_aug.shape[2]
    T = _pick_lane_tile(HWm)
    grid = (N, HWm // T)
    kernel = functools.partial(_mask_prob_kernel, o_w=o_w, tile=T)
    return pl.pallas_call(
        kernel,
        out_shape=jax.ShapeDtypeStruct((N, K, HWm), jnp.float32),
        grid_spec=pltpu.PrefetchScalarGridSpec(
            num_scalar_prefetch=0,
            grid=grid,
            in_specs=[
                pl.BlockSpec((1, D, T), lambda n, t: (n, 0, t)),
                pl.BlockSpec((1, K, DA), lambda n, t: (n, 0, 0)),
                pl.BlockSpec((1, K, 1), lambda n, t: (n, 0, 0)),
                pl.BlockSpec((1, K, 4), lambda n, t: (n, 0, 0)),
            ],
            out_specs=pl.BlockSpec((1, K, T), lambda n, t: (n, 0, t)),
        ),
        compiler_params=pltpu.CompilerParams(
            dimension_semantics=("parallel", "parallel")),
    )(pixel_embed_flat, e_aug, prop_margin, mask_boxes)


# ----------------------------------- JAX glue ----------------------------------------
def _select_topk(scores, reg, locations, embed_flat, margin_flat, im_h, im_w, *, K):
    """Fixed-size stand-in for nonzero + boolean gather + per-image topk.

    Decodes boxes only for the K selected proposals (the kernel no longer writes a
    full (4, HW) decoded-box map)."""
    C, HW = scores.shape
    flat = scores.reshape(-1)                                   # thresholded in-kernel
    vals, idx = jax.lax.top_k(flat, K)
    valid = vals >= 0.0                                         # non-candidates == -1
    labels = idx // HW + 1                                      # class (1-based)
    loc = idx % HW                                              # spatial location

    per_reg = reg[:, loc]                                       # (4, K)  [l, t, r, b]
    per_loc = locations[loc]                                    # (K, 2)  [x, y]
    x1 = per_loc[:, 0] - per_reg[0]
    y1 = per_loc[:, 1] - per_reg[1]
    x2 = per_loc[:, 0] + per_reg[2]
    y2 = per_loc[:, 1] + per_reg[3]
    # clip_to_image (TO_REMOVE=1)
    x1 = jnp.clip(x1, 0.0, im_w - 1.0)
    y1 = jnp.clip(y1, 0.0, im_h - 1.0)
    x2 = jnp.clip(x2, 0.0, im_w - 1.0)
    y2 = jnp.clip(y2, 0.0, im_h - 1.0)
    boxes = jnp.stack([x1, y1, x2, y2], axis=1)                 # (K, 4)

    sel_embed = embed_flat[:, loc].T                            # (K, De)
    sel_margin = margin_flat[:, loc].T                          # (K, 1)
    # remove_small_boxes with min_size=0 keeps everything.
    return boxes, labels, jnp.where(valid, vals, 0.0), sel_embed, sel_margin, valid


def embed_mask_postprocess(locations, box_cls, box_regression, centerness,
                           proposal_embed, proposal_margin, pixel_embed, image_sizes):
    """Single-FPN-level version of EmbedMaskPostProcessor.forward (lists of length 1)."""
    l, o, b, c = locations[0], box_cls[0], box_regression[0], centerness[0]
    em, mar = proposal_embed[0], proposal_margin[0]

    N, C, H, W = o.shape
    HW = H * W
    De = em.shape[1]

    if FIX_MARGIN:
        mar = jnp.ones_like(mar) * INIT_MARGIN

    # NCHW -> [N, C, H*W]  (spatial flattening order identical to torch's NHWC reshape)
    cls_r = o.reshape(N, C, HW).astype(jnp.float32)
    ctr_r = c.reshape(N, 1, HW).astype(jnp.float32)
    reg_r = b.reshape(N, 4, HW).astype(jnp.float32)
    em_r = em.reshape(N, De, HW).astype(jnp.float32)
    mar_r = mar.reshape(N, 1, HW).astype(jnp.float32)
    loc_arr = jnp.asarray(l, jnp.float32)                       # (HW, 2)

    # Kernel 1: thresholded scores only (single output stream).
    scores = score_kernel_call(cls_r, ctr_r)

    K = PRE_NMS_TOP_N
    h_arr = jnp.asarray([hw[0] for hw in image_sizes], jnp.float32)
    w_arr = jnp.asarray([hw[1] for hw in image_sizes], jnp.float32)
    select = jax.vmap(functools.partial(_select_topk, K=K),
                      in_axes=(0, 0, None, 0, 0, 0, 0))
    sel_boxes, labels, sel_scores, sel_embed, sel_margin, valid = select(
        scores, reg_r, loc_arr, em_r, mar_r, h_arr, w_arr)

    # Zero-out fields for invalid (padded) top-K slots so downstream consumers see
    # explicit empties instead of garbage gathers.
    valid_f = valid.astype(jnp.float32)
    sel_boxes = sel_boxes * valid_f[..., None]
    labels = jnp.where(valid, labels, 0)

    # TODO(synk): boxlist_ml_nms + kthvalue (select_over_all_levels) produce
    # data-dependent shapes and have no clean Pallas equivalent; all top-K kept.

    # Bilinear upsample of pixel_embed (glue; align_corners=False semantics).
    # TODO(synk): fuse the 2x bilinear upsample into the mask kernel to avoid
    # materializing the upsampled embedding in HBM.
    Np, dim, m_h, m_w = pixel_embed.shape
    o_h, o_w = m_h * MASK_SCALE_FACTOR, m_w * MASK_SCALE_FACTOR
    pe_up = jax.image.resize(pixel_embed.astype(jnp.float32),
                             (Np, dim, o_h, o_w), method="bilinear", antialias=False)
    # bf16 stream into the kernel halves the dominant DMA; math stays f32 in-kernel.
    pe_flat = pe_up.reshape(Np, dim, o_h * o_w).astype(jnp.bfloat16)

    stride = FPN_STRIDES[0] / MASK_SCALE_FACTOR
    mb = (sel_boxes / stride).astype(jnp.int32)                 # torch .int() truncation
    x1 = jnp.maximum(mb[..., 0] - 2, 0)
    y1 = jnp.maximum(mb[..., 1] - 2, 0)
    x2 = jnp.minimum(mb[..., 2] + 2, o_w)
    y2 = jnp.minimum(mb[..., 3] + 2, o_h)
    mask_boxes = jnp.stack([x1, y1, x2, y2], axis=-1).astype(jnp.int32)   # (N, K, 4)

    # Augmented proposal matrix for the single-matmul distance: [-2E | e2 | 1].
    e2 = jnp.sum(sel_embed * sel_embed, axis=-1, keepdims=True)           # (N, K, 1)
    e_aug = jnp.concatenate(
        [-2.0 * sel_embed, e2, jnp.ones_like(e2)], axis=-1).astype(jnp.float32)

    mask_prob = mask_prob_call(pe_flat, e_aug, sel_margin, mask_boxes, o_w)
    mask_prob = mask_prob.reshape(Np, K, o_h, o_w)
    mask_prob = mask_prob * valid_f[:, :, None, None]

    # TODO(synk): POSTPROCESS_MASKS branch (upsample masks by `stride` + gt(mask_th))
    # intentionally disabled (POST_PROCESS_MASKS=False); stride/mask_th returned as fields.
    return {
        "boxes": sel_boxes,
        "labels": labels,
        "scores": sel_scores,
        "masks": mask_prob,
        "valid": valid,
        "mask_stride": jnp.float32(stride),
        "mask_th": jnp.float32(MASK_TH),
    }


# ------------------------------------- main -------------------------------------------
if __name__ == "__main__":
    key = jax.random.PRNGKey(0)
    N, C, H, W = 2, 4, 16, 16            # batch, class channels, feature spatial
    De = 8                               # embedding dim
    m_h = m_w = 16                       # pixel_embed spatial (pre-upsample)

    ks = jax.random.split(key, 6)
    box_cls = jax.random.normal(ks[0], (N, C, H, W), jnp.float32)
    box_regression = jax.random.uniform(ks[1], (N, 4, H, W), jnp.float32, 0.0, 32.0)
    centerness = jax.random.normal(ks[2], (N, 1, H, W), jnp.float32)
    proposal_embed = jax.random.normal(ks[3], (N, De, H, W), jnp.float32)
    proposal_margin = jax.random.uniform(ks[4], (N, 1, H, W), jnp.float32, 0.1, 1.0)
    pixel_embed = jax.random.normal(ks[5], (N, De, m_h, m_w), jnp.float32)

    # FCOS-style locations for FPN level 0 (stride 8): centers of each cell.
    s0 = FPN_STRIDES[0]
    xs = jnp.arange(W, dtype=jnp.float32) * s0 + s0 // 2
    ys = jnp.arange(H, dtype=jnp.float32) * s0 + s0 // 2
    yy_g, xx_g = jnp.meshgrid(ys, xs, indexing="ij")
    locations = jnp.stack([xx_g.reshape(-1), yy_g.reshape(-1)], axis=1)   # (HW, 2)

    image_sizes = [(H * s0, W * s0)] * N   # (h, w)

    out = embed_mask_postprocess(
        [locations], [box_cls], [box_regression], [centerness],
        [proposal_embed], [proposal_margin], pixel_embed, image_sizes,
    )
    jax.block_until_ready(out)
    print("KERNEL_OK")
</pallas_src>

<mosaic_0001>
module attributes {stable_mosaic.version = 11 : i64} {
  func.func @_score_kernel(%arg0: i32, %arg1: i32, %arg2: memref<1x4x256xf32, #tpu.memory_space<vmem>>, %arg3: memref<1x1x256xf32, #tpu.memory_space<vmem>>, %arg4: memref<1x4x256xf32, #tpu.memory_space<vmem>>) attributes {dimension_semantics = [#tpu.dimension_semantics<parallel>, #tpu.dimension_semantics<parallel>], iteration_bounds = array<i64: 2, 1>, scalar_prefetch = 0 : i64, scratch_operands = 0 : i64, tpu.core_type = #tpu.core_type<tc>, window_params = [{transform_indices = @transform_0, window_bounds = array<i64: 1, 4, 256>}, {transform_indices = @transform_1, window_bounds = array<i64: 1, 1, 256>}, {transform_indices = @transform_2, window_bounds = array<i64: 1, 4, 256>}]} {
    %c0 = arith.constant 0 : index
    %c0_0 = arith.constant 0 : index
    %c0_1 = arith.constant 0 : index
    %0 = vector.load %arg2[%c0, %c0_0, %c0_1] : memref<1x4x256xf32, #tpu.memory_space<vmem>>, vector<1x4x256xf32>
    %1 = vector.shape_cast %0 : vector<1x4x256xf32> to vector<4x256xf32>
    %2 = arith.negf %1 : vector<4x256xf32>
    %3 = math.exp %2 : vector<4x256xf32>
    %cst = arith.constant 1.000000e+00 : f32
    %4 = vector.broadcast %cst : f32 to vector<4x256xf32>
    %5 = arith.addf %4, %3 : vector<4x256xf32>
    %6 = arith.divf %4, %5 : vector<4x256xf32>
    %c0_2 = arith.constant 0 : index
    %c0_3 = arith.constant 0 : index
    %c0_4 = arith.constant 0 : index
    %7 = vector.load %arg3[%c0_2, %c0_3, %c0_4] : memref<1x1x256xf32, #tpu.memory_space<vmem>>, vector<1x1x256xf32>
    %8 = vector.shape_cast %7 : vector<1x1x256xf32> to vector<1x256xf32>
    %9 = arith.negf %8 : vector<1x256xf32>
    %10 = math.exp %9 : vector<1x256xf32>
    %cst_5 = arith.constant 1.000000e+00 : f32
    %11 = vector.broadcast %cst_5 : f32 to vector<1x256xf32>
    %12 = arith.addf %11, %10 : vector<1x256xf32>
    %13 = arith.divf %11, %12 : vector<1x256xf32>
    %cst_6 = arith.constant 5.000000e-02 : f32
    %14 = vector.broadcast %cst_6 : f32 to vector<4x256xf32>
    %15 = arith.cmpf ogt, %6, %14 : vector<4x256xf32>
    %16 = vector.broadcast %13 : vector<1x256xf32> to vector<4x256xf32>
    %17 = arith.mulf %6, %16 : vector<4x256xf32>
    %cst_7 = arith.constant -1.000000e+00 : f32
    %18 = vector.broadcast %cst_7 : f32 to vector<4x256xf32>
    %19 = arith.select %15, %17, %18 : vector<4x256xi1>, vector<4x256xf32>
    %c0_8 = arith.constant 0 : index
    %c0_9 = arith.constant 0 : index
    %c0_10 = arith.constant 0 : index
    %20 = vector.load %arg4[%c0_8, %c0_9, %c0_10] : memref<1x4x256xf32, #tpu.memory_space<vmem>>, vector<1x4x256xf32>
    %21 = vector.shape_cast %20 : vector<1x4x256xf32> to vector<4x256xf32>
    %22 = vector.shape_cast %19 : vector<4x256xf32> to vector<1x4x256xf32>
    tpu.vector_store %arg4[%c0_8, %c0_9, %c0_10], %22 {strides = array<i32>} : memref<1x4x256xf32, #tpu.memory_space<vmem>>, vector<1x4x256xf32>,
    return
  }
  func.func @transform_0(%arg0: i32, %arg1: i32) -> (i32, i32, i32) {
    %c0_i32 = arith.constant 0 : i32
    %c0_i32_0 = arith.constant 0 : i32
    return %arg0, %c0_i32, %arg1 : i32, i32, i32
  }
  func.func @transform_1(%arg0: i32, %arg1: i32) -> (i32, i32, i32) {
    %c0_i32 = arith.constant 0 : i32
    %c0_i32_0 = arith.constant 0 : i32
    return %arg0, %c0_i32, %arg1 : i32, i32, i32
  }
  func.func @transform_2(%arg0: i32, %arg1: i32) -> (i32, i32, i32) {
    %c0_i32 = arith.constant 0 : i32
    %c0_i32_0 = arith.constant 0 : i32
    return %arg0, %c0_i32, %arg1 : i32, i32, i32
  }
}

</mosaic_0001>

<bundles_post_ra>
// kernel: tpu_custom_call.1
= control target key start
LH: loop header
LB: loop body
LE: loop exit
PB: predicated region body
PF: predicated region fallthrough
CT: control target
= control target key end

     0   :  { %7 = vsyncpa [#allocation3], 0  ;;  %s813_s0 = inlined_call_operand.hbm [shape: f32[2,4,256], index: 0, kind: input, shape index: {}]   ;;  %s814_s1 = inlined_call_operand.hbm [shape: f32[2,1,256], index: 1, kind: input, shape index: {}]   ;;  %s815_s2 = inlined_call_operand.hbm [shape: f32[2,4,256], index: 2, kind: output, shape index: {}]  }
   0x1   :  { %9 = vsyncpa [#allocation3 + $0x1], 0 }
   0x2   :  { %10 = vsyncpa [#allocation6], 0 }
   0x3   :  { %12 = vsyncpa [#allocation6 + $0x1], 0 }
   0x4   :  { %13 = vsyncpa [#allocation4], 0 }
   0x5   :  { %15 = vsyncpa [#allocation4 + $0x1], 0  ;;  %s665_s9 = smov 0   ;;  %s667_s10 = smov 0  }
   0x6   :  { %s669_s11 = smov 0   ;;  %s671_s12 = smov 0  }
   0x7   :  { %s673_s13 = smov 0   ;;  %s675_s14 = smov 0  }
   0x8 LB: > { %s405_s15 = sadd.s32 4294967295, %s648_s14   ;;  %s406_s16 = sadd.s32 4294967294, %s648_s14   ;;  %s648_s14 = sphi %s675_s14, %s21_s14   ;;  %s644_s13 = sphi %s673_s13, %s827_s13   ;;  %s640_s12 = sphi %s671_s12, %s826_s12   ;;  %s636_s11 = sphi %s669_s11, %s825_s11   ;;  %s632_s10 = sphi %s667_s10, %s824_s10   ;;  %s628_s9 = sphi %s665_s9, %s823_s9  }
   0x9   : > { %s33_s17 = sadd.s32 1, %s644_s13  ;;  %s42_s18 = sadd.s32 1, %s636_s11 }
   0xa   : > { %p35_p0 = scmp.ge.s32.totalorder %s33_s17, 2  ;;  %p49_p1 = scmp.ne.s32.totalorder %s636_s11, %s632_s10 }
   0xb   : > { %p50_p2 = scmp.eq.s32.totalorder %s648_s14, 0  ;;  %p55_p3 = scmp.ne.s32.totalorder %s632_s10, %s628_s9 }
   0xc   : > { %s829_s17 = smov (%p35_p0, %s33_s17), 0  ;;  %p56_p5 = scmp.eq.s32.totalorder %s405_s15, 0 }
   0xd   : > { %p706_p4 = por %p50_p2, %p49_p1  ;;  %s37_s20 = ssub.s32 %s644_s13, %s829_s17 }
   0xe   : > { %p109_p6 = scmp.eq.s32.totalorder %s405_s15, 1  ;;  %p40_p7 = scmp.eq.s32.totalorder %s37_s20, 0 }
   0xf   : > { %p712_p8 = por %p56_p5, %p55_p3  ;;  %p115_p10 = scmp.eq.s32.totalorder %s406_s16, 1 }
  0x10   : > { %p716_p9 = por %p109_p6, %p49_p1  ;;  %p408_p12 = scmp.ge.s32.totalorder %s648_s14, 2 }
  0x11   : > { %s721_s23 = scalar_select %p40_p7, %s636_s11, %s42_s18  }
  0x12   : > { %p723_p11 = por %p115_p10, %p55_p3  ;;  %p444_p13 = scmp.lt.s32.totalorder %s648_s14, 2 }
  0x13   : > { %s135_s25 = sand.u32 1, %s636_s11   ;;  %s425_s27 = sshll.u32 %s644_s13, 3 }
  0x14   : > { %s409_s26 = sshll.u32 %s135_s25, 3  ;;  %s146_s30 = scalar_lea.hbm %s813_s0, %s425_s27 }
  0x15   : > { %s139_s3 = scalar_lea.vmem [#allocation2], %s409_s26  ;;  %s148_s5 = sshll.u32 %s146_s30, 4  ;;  %s149_s5 = int_to_ptr.hbm [resolvable:$true] %s148_s5 }
  0x16   : > { %s150_s4 = sshll.u32 %s139_s3, 4  ;;  %p736_p0 = pnand %p444_p13, %p706_p4  ;;  %s151_s4 = int_to_ptr.vmem [resolvable:$true] %s150_s4 }
  0x17   : > { %p414_p1 = scmp.ge.s32.totalorder %s648_s14, 1  ;;  %p176_p2 = scmp.lt.s32.totalorder %s648_s14, 3 }
  0x18   : > { %s136_s7 = scalar_lea.sflag [#allocation3], %s135_s25  ;;  %s412_s8 = sshll.u32 %s135_s25, 1 }
  0x19   : > { %436 = dma.hbm_to_vmem [thread:$0]  (!%p736_p0), %s149_s5, 128, %s151_s4, %s136_s7  }
  0x1a   : > { %p177_p3 = pnand %p414_p1, %p176_p2  ;;  %s413_s15 = sshll.u32 %s644_s13, 1 }
  0x1b   : > { %s167_s20 = scalar_lea.hbm %s814_s1, %s413_s15  ;;  %s161_s26 = scalar_lea.vmem [#allocation5], %s412_s8 }
  0x1c   : > { %s171_s19 = sshll.u32 %s161_s26, 4  ;;  %s169_s27 = sshll.u32 %s167_s20, 4  ;;  %s172_s19 = int_to_ptr.vmem [resolvable:$true] %s171_s19  ;;  %s170_s27 = int_to_ptr.hbm [resolvable:$true] %s169_s27 }
  0x1d   : > { %s158_s28 = scalar_lea.sflag [#allocation6], %s135_s25  ;;  %180 = sbr.rel (%p177_p3) target bundleno = 79 (0x4f), region = 28 }
  0x1e   : > { %439 = dma.hbm_to_vmem [thread:$0]  (!%p736_p0), %s170_s27, 32, %s172_s19, %s158_s28  }
  0x1f   : > { %s751_s29 = sand.u32 (!%p177_p3), 1, %s632_s10  }
  0x20   : > { %s415_s30 = sshll.u32 (!%p177_p3), %s751_s29, 3  ;;  %s183_s3 = scalar_lea.sflag (!%p177_p3), [#allocation3], %s751_s29 }
  0x21   : > { %s186_s4 = scalar_lea.vmem (!%p177_p3), [#allocation2], %s415_s30 }
  0x22   : > { %615 = dma.done.wait (%p712_p8), %s183_s3, 128  }
  0x23   : > { %617 = vsyncadd (%p712_p8), %s183_s3, 4294967168  ;;  %s416_s25 = sshll.u32 %s751_s29, 1  ;;  %s193_s5 = scalar_lea.sflag [#allocation6], %s751_s29 }
  0x24   : > { %s196_s6 = scalar_lea.vmem [#allocation5], %s416_s25 }
  0x25   : > { %619 = dma.done.wait (%p712_p8), %s193_s5, 32  }
  0x26   : > { %621 = vsyncadd (%p712_p8), %s193_s5, 4294967264  ;;  %v246_v0 = vld [vmem:[%s196_s6] sm:$0x3]  ;;  %v226_v1 = vld [vmem:[%s186_s4] sm:$0xff]  ;;  %s426_s21 = sshll.u32 %s640_s12, 3  ;;  %vm271_vm8 = vcmask 1043456  }
  0x27   : > { %v418_v2 = vmul.f32 -1.442695, %v226_v1  ;;  %v419_v3 = vmul.f32 -1.442695, %v246_v0  ;;  %s291_s15 = scalar_lea.hbm %s815_s2, %s426_s21  ;;  %s222_s16 = scalar_lea.vmem [#allocation7], %s415_s30 }
  0x28   : > { %s293_s12 = sshll.u32 %s222_s16, 4  ;;  %s295_s18 = sshll.u32 %s291_s15, 4  ;;  %s294_s12 = int_to_ptr.vmem [resolvable:$true] %s293_s12  ;;  %s296_s18 = int_to_ptr.hbm [resolvable:$true] %s295_s18 }
  0x29   : > { %494 = vpow2.f32 %v418_v2  ;;  %s278_s20 = scalar_lea.sflag [#allocation4], %s751_s29  ;;  %s576_s26 = sshra.s32 %s296_s18, 4  ;;  %s577_s26 = int_to_ptr.hbm [resolvable:$true] %s576_s26 }
  0x2a   : > { %496 = vpow2.f32 %v419_v3  ;;  %s578_s19 = scalar_lea.hbm %s577_s26, 8  ;;  %s582_s30 = scalar_lea.hbm %s815_s2, 16 }
  0x2b   : > { %p579_p4 = scmp.ne.s32.totalorder %s577_s26, %s578_s19  ;;  %p583_p7 = scmp.lt.s32.totalorder %s577_s26, %s815_s2 }
  0x2c   : > { %p584_p8 = scmp.lt.s32.totalorder %s582_s30, %s578_s19 }
  0x2d   : > { %p580_p5 = pnand %p579_p4, %p716_p9 }
  0x2e   : > { %p585_p10 = por %p584_p8, %p583_p7 }
  0x2f   : > { %v495_v4 = vpop.eup %494  ;;  %p581_p6 = pneg %p580_p5 }
  0x30   : > { %v497_v5 = vpop.eup %496  ;;  %v230_v6 = vadd.f32 1.0, %v495_v4 }
  0x31   : > { %v250_v7 = vadd.f32 1.0, %v497_v5  ;;  %p586_p13 = pnand %p585_p10, %p581_p6 }
  0x32   : > { %498 = vrcp.f32 %v230_v6  ;;  %vm236_vm0 = vweird.f32 %v230_v6  ;;  %v242_v17 = vand.u32 2147483648, %v230_v6  ;;  %v240_v19 = vand.u32 2147483647, %v230_v6 }
  0x33   : > { %500 = vrcp.f32 %v250_v7  ;;  %v262_v13 = vand.u32 2147483648, %v250_v7  ;;  %vm256_vm2 = vweird.f32 %v250_v7  ;;  %v260_v15 = vand.u32 2147483647, %v250_v7 }
  0x34   : > { %v243_v24 = vor.u32 1.1754944e-38, %v242_v17  ;;  %vm241_vm7 = vcmp.eq.f32.partialorder %v240_v19, 8.507059e+37 }
  0x35   : > { %v263_v22 = vor.u32 1.1754944e-38, %v262_v13  ;;  %vm261_vm6 = vcmp.eq.f32.partialorder %v260_v15, 8.507059e+37 }
  0x38   : > { %v499_v8 = vpop.eup %498 }
  0x39   : > { %v501_v9 = vpop.eup %500  ;;  %v232_v10 = vmul.f32 %v499_v8, %v230_v6  ;;  %vm237_vm1 = vweird.f32 %v499_v8 }
  0x3a   : > { %v252_v11 = vmul.f32 %v501_v9, %v250_v7  ;;  %vm257_vm3 = vweird.f32 %v501_v9  ;;  %vm767_vm4 = vmor %vm236_vm0, %vm237_vm1 }
  0x3b   : > { %v233_v12 = vsub.f32 1.0, %v232_v10  ;;  %vm258_vm5 = vmor %vm256_vm2, %vm257_vm3 }
  0x3c   : > { %v253_v14 = vsub.f32 1.0, %v252_v11 }
  0x3d   : > { %v234_v16 = vmul.f32 %v499_v8, %v233_v12 }
  0x3e   : > { %v254_v20 = vmul.f32 %v501_v9, %v253_v14 }
  0x3f   : > { %v235_v21 = vadd.f32 %v499_v8, %v234_v16 }
  0x40   : > { %v255_v23 = vadd.f32 %v501_v9, %v254_v20 }
  0x41   : > { %v239_v25 = vsel %vm767_vm4, %v499_v8, %v235_v21 }
  0x42   : > { %v259_v26 = vsel %vm258_vm5, %v501_v9, %v255_v23  ;;  %v244_v30 = vsel %vm241_vm7, %v243_v24, %v239_v25 }
  0x43   : > { %v264_v27 = vsel %vm261_vm6, %v263_v22, %v259_v26  ;;  %vm266_vm9 = vcmp.gt.f32.partialorder %v244_v30, 0.05 }
  0x44   : > { %v268_v28 = vperm.slane %v264_v27, 0  ;;  %v269_v29 = vperm.slane %v264_v27, 1 }
  0x46   : > { %v270_v31 = vrot.slane %v269_v29, 4 }
  0x48   : > { %v272_v32 = vsel %vm271_vm8, %v268_v28, %v270_v31 }
  0x49   : > { %v274_v33 = vmul.f32 %v272_v32, %v244_v30 }
  0x4b   : > { %v275_v34 = vsel %vm266_vm9, %v274_v33, -1.0 }
  0x4c   : > { %276 = vst [vmem:[%s222_s16] sm:$0xff] %v275_v34 }
  0x4d   : > { %589 = shalt.err (!%p586_p13)
}
  0x4e   : > { %431 = dma.vmem_to_hbm [thread:$0]  (%p716_p9), %s294_s12, 128, %s296_s18, %s278_s20  }
  0x4f PF: > { %s307_s29 = sand.u32 1, %s628_s9   ;;  %p441_p0 = pnand %p408_p12, %p723_p11 }
  0x50   : > { %s308_s25 = scalar_lea.sflag [#allocation4], %s307_s29 }
  0x51   : > { %p442_p1 = pneg %p441_p0 }
  0x53   : > { %623 = dma.done.wait (%p442_p1), %s308_s25, 128  }
  0x54   : > { %625 = vsyncadd (%p442_p1), %s308_s25, 4294967168  ;;  %s21_s14 = sadd.s32 1, %s648_s14   ;;  %s823_s9 = smov %s632_s10 }
  0x55   : > { %p18_p2 = scmp.ge.s32.totalorder %s21_s14, 4   ;;  %s824_s10 = smov %s636_s11 }
  0x56   : > { %s825_s11 = smov %s721_s23  ;;  %s826_s12 = smov %s644_s13 }
  0x57   : > { %s827_s13 = smov %s829_s17  ;;  %20 = sbr.rel (!%p18_p2) target bundleno = 8 (0x8), region = 86 }
  0x5c   :  { %314 = vsyncpa [#allocation3], 1 }
  0x5d   :  { %316 = vsyncpa [#allocation3 + $0x1], 1 }
  0x5e   :  { %317 = vsyncpa [#allocation6], 1 }
  0x5f   :  { %319 = vsyncpa [#allocation6 + $0x1], 1 }
  0x60   :  { %320 = vsyncpa [#allocation4], 1 }
  0x61   :  { %322 = vsyncpa [#allocation4 + $0x1], 1 }

</bundles_post_ra>
